<compile_context>
chip_gen: v5e
topology: v5e:2x2
jax: 0.10.0
libtpu: 0.0.40
codegen_flags: <defaults>
</compile_context>

<pallas_src>
import jax
import jax.numpy as jnp
from jax.experimental import pallas as pl
from jax.experimental.pallas import tpu as pltpu

F32 = jnp.float32
BF16 = jnp.bfloat16


# ----------------------------------------------------------------------------
# Pallas kernel: full forward pass for one batch tile, everything in VMEM.
# ----------------------------------------------------------------------------
def _wsal_kernel(
    x_ref,                                    # (TB, 392) f32: [ch0 | ch1]
    w1_ref, b1_ref, w2_ref, b2_ref, w3_ref, b3_ref,
    wh1_ref, bh1_ref, wh2_ref, bh2_ref, wh3_ref, bh3_ref,
    out_ref,                                  # (TB, 128) f32 packed output
):
    tb = x_ref.shape[0]

    xall = x_ref[...]                                        # (TB, 392)
    xa = xall[:, 0:196]                                      # channel 0
    xb = xall[:, 196:392]                                    # channel 1
    # Fold channel dim into M: shared tower runs once on 2*TB rows.
    xs = jnp.concatenate([xa, xb], axis=0)                   # (2TB, 196)

    # ---- shared tower (BN folded into W2 / W3 at init; eval semantics) ----
    h = jnp.dot(xs.astype(BF16), w1_ref[...], preferred_element_type=F32) + b1_ref[...]
    h = jnp.maximum(h, 0.0)
    h = jnp.dot(h.astype(BF16), w2_ref[...], preferred_element_type=F32) + b2_ref[...]
    h = jnp.maximum(h, 0.0)
    logits = jnp.dot(h.astype(BF16), w3_ref[...], preferred_element_type=F32) + b3_ref[...]

    # Softmax over features (dim=1), numerically stable; reciprocal on EUP.
    m = jnp.max(logits, axis=-1, keepdims=True)
    e = jnp.exp(logits - m)
    inv = pl.reciprocal(jnp.sum(e, axis=-1, keepdims=True), approx=True)
    probs = e * inv                                          # (2TB, 10)

    x1 = probs[0:tb]                                         # (TB, 10)
    x2 = probs[tb:2 * tb]                                    # (TB, 10)
    xcat = jnp.concatenate([x1, x2], axis=1)                 # (TB, 20) == cat((x1,x2),1)

    # ---- head (Dropout = identity in eval; BN folded into Wh2 / wh3) ----
    h = jnp.dot(xcat.astype(BF16), wh1_ref[...], preferred_element_type=F32) + bh1_ref[...]
    h = jnp.maximum(h, 0.0)
    h = jnp.dot(h.astype(BF16), wh2_ref[...], preferred_element_type=F32) + bh2_ref[...]
    h = jnp.maximum(h, 0.0)
    # Linear(84, 1): an N=1 matmul wastes the MXU -> VPU multiply + reduction.
    z = jnp.sum(h * wh3_ref[...], axis=-1, keepdims=True) + bh3_ref[...]
    res = jax.nn.sigmoid(z)                                  # (TB, 1)

    # Lane-dense packed output: cols [0:10)=x1, [10:20)=x2, [20]=res, rest 0.
    pad = jnp.zeros((tb, 128 - 21), F32)
    out_ref[...] = jnp.concatenate([xcat, res, pad], axis=1)


# ----------------------------------------------------------------------------
# Parameters (deterministic, PyTorch-Linear-style init), BN folded at init.
# ----------------------------------------------------------------------------
def _linear_params(key, fan_in, fan_out):
    kw, kb = jax.random.split(key)
    bound = 1.0 / jnp.sqrt(jnp.float32(fan_in))
    w = jax.random.uniform(kw, (fan_in, fan_out), F32, -bound, bound)  # (in, out)
    b = jax.random.uniform(kb, (1, fan_out), F32, -bound, bound)
    return w, b


def _bn_affine(num_features, eps=1e-5):
    # PyTorch eval-mode defaults: gamma=1, beta=0, running_mean=0, running_var=1
    gamma = jnp.ones((1, num_features), F32)
    beta = jnp.zeros((1, num_features), F32)
    mean = jnp.zeros((1, num_features), F32)
    var = jnp.ones((1, num_features), F32)
    scale = gamma / jnp.sqrt(var + eps)
    shift = beta - mean * scale
    return scale, shift


def init_params(seed=0):
    key = jax.random.PRNGKey(seed)
    keys = jax.random.split(key, 6)
    # shared tower (Pre_WSAL_MLP)
    w1, b1 = _linear_params(keys[0], 196, 200)
    s1, t1 = _bn_affine(200)
    w2, b2 = _linear_params(keys[1], 200, 84)
    s2, t2 = _bn_affine(84)
    w3, b3 = _linear_params(keys[2], 84, 10)
    # head
    wh1, bh1 = _linear_params(keys[3], 20, 200)
    sh1, th1 = _bn_affine(200)
    wh2, bh2 = _linear_params(keys[4], 200, 84)
    sh2, th2 = _bn_affine(84)
    wh3, bh3 = _linear_params(keys[5], 84, 1)

    # Fold each eval-mode BN (scale s, shift t) into the FOLLOWING Linear:
    #   (h*s + t) @ W + b == h @ (s^T ⊙ W) + (b + t @ W)
    w2f, b2f = w2 * s1.T, b2 + t1 @ w2
    w3f, b3f = w3 * s2.T, b3 + t2 @ w3
    wh2f, bh2f = wh2 * sh1.T, bh2 + th1 @ wh2
    wh3f, bh3f = wh3 * sh2.T, bh3 + th2 @ wh3          # (84,1), (1,1)

    return {
        "w1": w1.astype(BF16), "b1": b1,
        "w2": w2f.astype(BF16), "b2": b2f,
        "w3": w3f.astype(BF16), "b3": b3f,
        "wh1": wh1.astype(BF16), "bh1": bh1,
        "wh2": wh2f.astype(BF16), "bh2": bh2f,
        "wh3_row": wh3f.T, "bh3": bh3f,                # (1,84) f32, (1,1) f32
    }


# ----------------------------------------------------------------------------
# Wrapper: free contiguous reshape, batch tiling, pallas_call, output unpack.
# ----------------------------------------------------------------------------
def _round_up(n, m):
    return ((n + m - 1) // m) * m


@jax.jit
def ws_al_mlpnet_forward(x, params):
    # x: (B, 2, 14, 14) float32  (PyTorch-style layout)
    B = x.shape[0]
    xr = x.reshape(B, 392).astype(F32)          # contiguous -> free, no HBM dup

    # Batch tiling: ~512-row tiles, multiples of 8; pad batch to a tile multiple.
    n_tiles = max(1, -(-B // 512))
    TB = _round_up(-(-B // n_tiles), 8)
    B_pad = TB * n_tiles
    if B_pad != B:
        xr = jnp.pad(xr, ((0, B_pad - B), (0, 0)))

    ordered = [
        xr,
        params["w1"], params["b1"], params["w2"], params["b2"],
        params["w3"], params["b3"],
        params["wh1"], params["bh1"], params["wh2"], params["bh2"],
        params["wh3_row"], params["bh3"],
    ]

    def _resident(a):
        # Full-array block, constant index -> fetched once, VMEM-resident.
        return pl.BlockSpec(a.shape, lambda i: (0,) * a.ndim)

    in_specs = [pl.BlockSpec((TB, 392), lambda i: (i, 0))]
    in_specs += [_resident(a) for a in ordered[1:]]

    weight_bytes = sum(int(a.size) * a.dtype.itemsize for a in ordered[1:])
    cost = pl.CostEstimate(
        flops=2 * B_pad * (2 * (196 * 200 + 200 * 84 + 84 * 10)
                           + 20 * 200 + 200 * 84 + 84),
        transcendentals=B_pad * (2 * 10 + 2 + 1),
        bytes_accessed=B_pad * (392 + 128) * 4 + weight_bytes,
    )

    packed = pl.pallas_call(
        _wsal_kernel,
        out_shape=jax.ShapeDtypeStruct((B_pad, 128), F32),
        grid=(B_pad // TB,),
        in_specs=in_specs,
        out_specs=pl.BlockSpec((TB, 128), lambda i: (i, 0)),
        compiler_params=pltpu.CompilerParams(
            dimension_semantics=("parallel",),
            vmem_limit_bytes=32 * 1024 * 1024,
        ),
        cost_estimate=cost,
    )(*ordered)

    packed = packed[:B]
    x1 = packed[:, 0:10]
    x2 = packed[:, 10:20]
    res = packed[:, 20:21]
    return x1, x2, res


# ----------------------------------------------------------------------------
# Pure-JAX reference (f32, exact math) for correctness checking.
# ----------------------------------------------------------------------------
def reference_forward(x, params):
    B = x.shape[0]
    xa = x[:, 0].reshape(B, 196).astype(F32)
    xb = x[:, 1].reshape(B, 196).astype(F32)

    def tower(xx):
        h = xx @ params["w1"].astype(F32) + params["b1"]
        h = jnp.maximum(h, 0.0)
        h = h @ params["w2"].astype(F32) + params["b2"]
        h = jnp.maximum(h, 0.0)
        logits = h @ params["w3"].astype(F32) + params["b3"]
        return jax.nn.softmax(logits, axis=-1)

    x1 = tower(xa)
    x2 = tower(xb)
    xc = jnp.concatenate([x1, x2], axis=1)
    h = jnp.maximum(xc @ params["wh1"].astype(F32) + params["bh1"], 0.0)
    h = jnp.maximum(h @ params["wh2"].astype(F32) + params["bh2"], 0.0)
    res = jax.nn.sigmoid(jnp.sum(h * params["wh3_row"], axis=-1, keepdims=True)
                         + params["bh3"])
    return x1, x2, res


if __name__ == "__main__":
    B = 8
    key = jax.random.PRNGKey(0)
    x = jax.random.normal(key, (B, 2, 14, 14), F32)
    params = init_params(seed=0)

    x1, x2, res = ws_al_mlpnet_forward(x, params)
    jax.block_until_ready((x1, x2, res))

    r1, r2, rr = reference_forward(x, params)

    assert x1.shape == (B, 10) and x2.shape == (B, 10) and res.shape == (B, 1)
    # softmax rows sum to 1 (approx reciprocal -> ~1e-3 tolerance), sigmoid in (0,1)
    assert jnp.allclose(jnp.sum(x1, axis=1), 1.0, atol=1e-2)
    assert jnp.allclose(jnp.sum(x2, axis=1), 1.0, atol=1e-2)
    assert bool(jnp.all((res > 0.0) & (res < 1.0)))
    # agreement with f32 reference (bf16 MXU inputs + approx reciprocal)
    assert jnp.allclose(x1, r1, atol=3e-2)
    assert jnp.allclose(x2, r2, atol=3e-2)
    assert jnp.allclose(res, rr, atol=3e-2)
    print("KERNEL_OK")
</pallas_src>

<mosaic_0001>
module attributes {stable_mosaic.version = 11 : i64} {
  func.func @_wsal_kernel(%arg0: i32, %arg1: memref<8x392xf32, #tpu.memory_space<vmem>>, %arg2: memref<196x200xbf16, #tpu.memory_space<vmem>>, %arg3: memref<1x200xf32, #tpu.memory_space<vmem>>, %arg4: memref<200x84xbf16, #tpu.memory_space<vmem>>, %arg5: memref<1x84xf32, #tpu.memory_space<vmem>>, %arg6: memref<84x10xbf16, #tpu.memory_space<vmem>>, %arg7: memref<1x10xf32, #tpu.memory_space<vmem>>, %arg8: memref<20x200xbf16, #tpu.memory_space<vmem>>, %arg9: memref<1x200xf32, #tpu.memory_space<vmem>>, %arg10: memref<200x84xbf16, #tpu.memory_space<vmem>>, %arg11: memref<1x84xf32, #tpu.memory_space<vmem>>, %arg12: memref<1x84xf32, #tpu.memory_space<vmem>>, %arg13: memref<1x1xf32, #tpu.memory_space<vmem>>, %arg14: memref<8x128xf32, #tpu.memory_space<vmem>>) attributes {dimension_semantics = [#tpu.dimension_semantics<parallel>], iteration_bounds = array<i64: 1>, scalar_prefetch = 0 : i64, scratch_operands = 0 : i64, tpu.core_type = #tpu.core_type<tc>, window_params = [{transform_indices = @transform_0, window_bounds = array<i64: 8, 392>}, {pipeline_mode = #tpu.pipeline_mode<synchronous>, transform_indices = @transform_1, window_bounds = array<i64: 196, 200>}, {pipeline_mode = #tpu.pipeline_mode<synchronous>, transform_indices = @transform_2, window_bounds = array<i64: 1, 200>}, {pipeline_mode = #tpu.pipeline_mode<synchronous>, transform_indices = @transform_3, window_bounds = array<i64: 200, 84>}, {pipeline_mode = #tpu.pipeline_mode<synchronous>, transform_indices = @transform_4, window_bounds = array<i64: 1, 84>}, {pipeline_mode = #tpu.pipeline_mode<synchronous>, transform_indices = @transform_5, window_bounds = array<i64: 84, 10>}, {pipeline_mode = #tpu.pipeline_mode<synchronous>, transform_indices = @transform_6, window_bounds = array<i64: 1, 10>}, {pipeline_mode = #tpu.pipeline_mode<synchronous>, transform_indices = @transform_7, window_bounds = array<i64: 20, 200>}, {pipeline_mode = #tpu.pipeline_mode<synchronous>, transform_indices = @transform_8, window_bounds = array<i64: 1, 200>}, {pipeline_mode = #tpu.pipeline_mode<synchronous>, transform_indices = @transform_9, window_bounds = array<i64: 200, 84>}, {pipeline_mode = #tpu.pipeline_mode<synchronous>, transform_indices = @transform_10, window_bounds = array<i64: 1, 84>}, {pipeline_mode = #tpu.pipeline_mode<synchronous>, transform_indices = @transform_11, window_bounds = array<i64: 1, 84>}, {pipeline_mode = #tpu.pipeline_mode<synchronous>, transform_indices = @transform_12, window_bounds = array<i64: 1, 1>}, {transform_indices = @transform_13, window_bounds = array<i64: 8, 128>}]} {
    %c0 = arith.constant 0 : index
    %c0_0 = arith.constant 0 : index
    %0 = vector.load %arg1[%c0, %c0_0] : memref<8x392xf32, #tpu.memory_space<vmem>>, vector<8x392xf32>
    %1 = vector.extract_strided_slice %0 {offsets = [0, 0], sizes = [8, 196], strides = [1, 1]} : vector<8x392xf32> to vector<8x196xf32>
    %2 = vector.extract_strided_slice %0 {offsets = [0, 196], sizes = [8, 196], strides = [1, 1]} : vector<8x392xf32> to vector<8x196xf32>
    %3 = tpu.concatenate %1, %2 in 0 : vector<8x196xf32>, vector<8x196xf32> -> vector<16x196xf32>
    %4 = arith.truncf %3 : vector<16x196xf32> to vector<16x196xbf16>
    %c0_1 = arith.constant 0 : index
    %c0_2 = arith.constant 0 : index
    %5 = vector.load %arg2[%c0_1, %c0_2] : memref<196x200xbf16, #tpu.memory_space<vmem>>, vector<196x200xbf16>
    %cst = arith.constant dense<0.000000e+00> : vector<16x200xf32>
    %6 = tpu.matmul %4, %5, %cst {dimension_numbers = #tpu.dot_dimension_numbers<[1], [0], [0], [1], [0, 0, 1, 1], [], []>} : vector<16x196xbf16>, vector<196x200xbf16>, vector<16x200xf32> -> vector<16x200xf32>
    %c0_3 = arith.constant 0 : index
    %c0_4 = arith.constant 0 : index
    %7 = vector.load %arg3[%c0_3, %c0_4] : memref<1x200xf32, #tpu.memory_space<vmem>>, vector<1x200xf32>
    %8 = vector.broadcast %7 : vector<1x200xf32> to vector<16x200xf32>
    %9 = arith.addf %6, %8 : vector<16x200xf32>
    %cst_5 = arith.constant 0.000000e+00 : f32
    %10 = vector.broadcast %cst_5 : f32 to vector<16x200xf32>
    %11 = arith.maximumf %9, %10 : vector<16x200xf32>
    %12 = arith.truncf %11 : vector<16x200xf32> to vector<16x200xbf16>
    %c0_6 = arith.constant 0 : index
    %c0_7 = arith.constant 0 : index
    %13 = vector.load %arg4[%c0_6, %c0_7] : memref<200x84xbf16, #tpu.memory_space<vmem>>, vector<200x84xbf16>
    %cst_8 = arith.constant dense<0.000000e+00> : vector<16x84xf32>
    %14 = tpu.matmul %12, %13, %cst_8 {dimension_numbers = #tpu.dot_dimension_numbers<[1], [0], [0], [1], [0, 0, 1, 1], [], []>} : vector<16x200xbf16>, vector<200x84xbf16>, vector<16x84xf32> -> vector<16x84xf32>
    %c0_9 = arith.constant 0 : index
    %c0_10 = arith.constant 0 : index
    %15 = vector.load %arg5[%c0_9, %c0_10] : memref<1x84xf32, #tpu.memory_space<vmem>>, vector<1x84xf32>
    %16 = vector.broadcast %15 : vector<1x84xf32> to vector<16x84xf32>
    %17 = arith.addf %14, %16 : vector<16x84xf32>
    %cst_11 = arith.constant 0.000000e+00 : f32
    %18 = vector.broadcast %cst_11 : f32 to vector<16x84xf32>
    %19 = arith.maximumf %17, %18 : vector<16x84xf32>
    %20 = arith.truncf %19 : vector<16x84xf32> to vector<16x84xbf16>
    %c0_12 = arith.constant 0 : index
    %c0_13 = arith.constant 0 : index
    %21 = vector.load %arg6[%c0_12, %c0_13] : memref<84x10xbf16, #tpu.memory_space<vmem>>, vector<84x10xbf16>
    %cst_14 = arith.constant dense<0.000000e+00> : vector<16x10xf32>
    %22 = tpu.matmul %20, %21, %cst_14 {dimension_numbers = #tpu.dot_dimension_numbers<[1], [0], [0], [1], [0, 0, 1, 1], [], []>} : vector<16x84xbf16>, vector<84x10xbf16>, vector<16x10xf32> -> vector<16x10xf32>
    %c0_15 = arith.constant 0 : index
    %c0_16 = arith.constant 0 : index
    %23 = vector.load %arg7[%c0_15, %c0_16] : memref<1x10xf32, #tpu.memory_space<vmem>>, vector<1x10xf32>
    %24 = vector.broadcast %23 : vector<1x10xf32> to vector<16x10xf32>
    %25 = arith.addf %22, %24 : vector<16x10xf32>
    %cst_17 = arith.constant dense<0xFF800000> : vector<16xf32>
    %26 = vector.multi_reduction <maximumf>, %25, %cst_17 [1] : vector<16x10xf32> to vector<16xf32>
    %27 = vector.shape_cast %26 : vector<16xf32> to vector<16x1xf32>
    %28 = vector.broadcast %27 : vector<16x1xf32> to vector<16x10xf32>
    %29 = arith.subf %25, %28 : vector<16x10xf32>
    %30 = math.exp %29 : vector<16x10xf32>
    %cst_18 = arith.constant dense<0.000000e+00> : vector<16xf32>
    %31 = vector.multi_reduction <add>, %30, %cst_18 [1] : vector<16x10xf32> to vector<16xf32>
    %32 = vector.shape_cast %31 : vector<16xf32> to vector<16x1xf32>
    %33 = tpu.reciprocal %32 {approx = true} : vector<16x1xf32> -> vector<16x1xf32>
    %34 = vector.broadcast %33 : vector<16x1xf32> to vector<16x10xf32>
    %35 = arith.mulf %30, %34 : vector<16x10xf32>
    %36 = vector.extract_strided_slice %35 {offsets = [0, 0], sizes = [8, 10], strides = [1, 1]} : vector<16x10xf32> to vector<8x10xf32>
    %37 = vector.extract_strided_slice %35 {offsets = [8, 0], sizes = [8, 10], strides = [1, 1]} : vector<16x10xf32> to vector<8x10xf32>
    %38 = tpu.concatenate %36, %37 in 1 : vector<8x10xf32>, vector<8x10xf32> -> vector<8x20xf32>
    %39 = arith.truncf %38 : vector<8x20xf32> to vector<8x20xbf16>
    %c0_19 = arith.constant 0 : index
    %c0_20 = arith.constant 0 : index
    %40 = vector.load %arg8[%c0_19, %c0_20] : memref<20x200xbf16, #tpu.memory_space<vmem>>, vector<20x200xbf16>
    %cst_21 = arith.constant dense<0.000000e+00> : vector<8x200xf32>
    %41 = tpu.matmul %39, %40, %cst_21 {dimension_numbers = #tpu.dot_dimension_numbers<[1], [0], [0], [1], [0, 0, 1, 1], [], []>} : vector<8x20xbf16>, vector<20x200xbf16>, vector<8x200xf32> -> vector<8x200xf32>
    %c0_22 = arith.constant 0 : index
    %c0_23 = arith.constant 0 : index
    %42 = vector.load %arg9[%c0_22, %c0_23] : memref<1x200xf32, #tpu.memory_space<vmem>>, vector<1x200xf32>
    %43 = vector.broadcast %42 : vector<1x200xf32> to vector<8x200xf32>
    %44 = arith.addf %41, %43 : vector<8x200xf32>
    %cst_24 = arith.constant 0.000000e+00 : f32
    %45 = vector.broadcast %cst_24 : f32 to vector<8x200xf32>
    %46 = arith.maximumf %44, %45 : vector<8x200xf32>
    %47 = arith.truncf %46 : vector<8x200xf32> to vector<8x200xbf16>
    %c0_25 = arith.constant 0 : index
    %c0_26 = arith.constant 0 : index
    %48 = vector.load %arg10[%c0_25, %c0_26] : memref<200x84xbf16, #tpu.memory_space<vmem>>, vector<200x84xbf16>
    %cst_27 = arith.constant dense<0.000000e+00> : vector<8x84xf32>
    %49 = tpu.matmul %47, %48, %cst_27 {dimension_numbers = #tpu.dot_dimension_numbers<[1], [0], [0], [1], [0, 0, 1, 1], [], []>} : vector<8x200xbf16>, vector<200x84xbf16>, vector<8x84xf32> -> vector<8x84xf32>
    %c0_28 = arith.constant 0 : index
    %c0_29 = arith.constant 0 : index
    %50 = vector.load %arg11[%c0_28, %c0_29] : memref<1x84xf32, #tpu.memory_space<vmem>>, vector<1x84xf32>
    %51 = vector.broadcast %50 : vector<1x84xf32> to vector<8x84xf32>
    %52 = arith.addf %49, %51 : vector<8x84xf32>
    %cst_30 = arith.constant 0.000000e+00 : f32
    %53 = vector.broadcast %cst_30 : f32 to vector<8x84xf32>
    %54 = arith.maximumf %52, %53 : vector<8x84xf32>
    %c0_31 = arith.constant 0 : index
    %c0_32 = arith.constant 0 : index
    %55 = vector.load %arg12[%c0_31, %c0_32] : memref<1x84xf32, #tpu.memory_space<vmem>>, vector<1x84xf32>
    %56 = vector.broadcast %55 : vector<1x84xf32> to vector<8x84xf32>
    %57 = arith.mulf %54, %56 : vector<8x84xf32>
    %cst_33 = arith.constant dense<0.000000e+00> : vector<8xf32>
    %58 = vector.multi_reduction <add>, %57, %cst_33 [1] : vector<8x84xf32> to vector<8xf32>
    %59 = vector.shape_cast %58 : vector<8xf32> to vector<8x1xf32>
    %c0_34 = arith.constant 0 : index
    %c0_35 = arith.constant 0 : index
    %60 = vector.load %arg13[%c0_34, %c0_35] : memref<1x1xf32, #tpu.memory_space<vmem>>, vector<1x1xf32>
    %61 = vector.broadcast %60 : vector<1x1xf32> to vector<8x1xf32>
    %62 = arith.addf %59, %61 : vector<8x1xf32>
    %63 = arith.negf %62 : vector<8x1xf32>
    %64 = math.exp %63 : vector<8x1xf32>
    %cst_36 = arith.constant 1.000000e+00 : f32
    %65 = vector.broadcast %cst_36 : f32 to vector<8x1xf32>
    %66 = arith.addf %65, %64 : vector<8x1xf32>
    %67 = arith.divf %65, %66 : vector<8x1xf32>
    %cst_37 = arith.constant 0.000000e+00 : f32
    %68 = vector.broadcast %cst_37 : f32 to vector<8x107xf32>
    %69 = tpu.concatenate %38, %67, %68 in 1 : vector<8x20xf32>, vector<8x1xf32>, vector<8x107xf32> -> vector<8x128xf32>
    %c0_38 = arith.constant 0 : index
    %c0_39 = arith.constant 0 : index
    %70 = vector.load %arg14[%c0_38, %c0_39] : memref<8x128xf32, #tpu.memory_space<vmem>>, vector<8x128xf32>
    tpu.vector_store %arg14[%c0_38, %c0_39], %69 {strides = array<i32>} : memref<8x128xf32, #tpu.memory_space<vmem>>, vector<8x128xf32>,
    return
  }
  func.func @transform_0(%arg0: i32) -> (i32, i32) {
    %c0_i32 = arith.constant 0 : i32
    %c0_i32_0 = arith.constant 0 : i32
    return %arg0, %c0_i32 : i32, i32
  }
  func.func @transform_1(%arg0: i32) -> (i32, i32) {
    %c0_i32 = arith.constant 0 : i32
    %c0_i32_0 = arith.constant 0 : i32
    %c0_i32_1 = arith.constant 0 : i32
    return %c0_i32, %c0_i32_0 : i32, i32
  }
  func.func @transform_2(%arg0: i32) -> (i32, i32) {
    %c0_i32 = arith.constant 0 : i32
    %c0_i32_0 = arith.constant 0 : i32
    %c0_i32_1 = arith.constant 0 : i32
    return %c0_i32, %c0_i32_0 : i32, i32
  }
  func.func @transform_3(%arg0: i32) -> (i32, i32) {
    %c0_i32 = arith.constant 0 : i32
    %c0_i32_0 = arith.constant 0 : i32
    %c0_i32_1 = arith.constant 0 : i32
    return %c0_i32, %c0_i32_0 : i32, i32
  }
  func.func @transform_4(%arg0: i32) -> (i32, i32) {
    %c0_i32 = arith.constant 0 : i32
    %c0_i32_0 = arith.constant 0 : i32
    %c0_i32_1 = arith.constant 0 : i32
    return %c0_i32, %c0_i32_0 : i32, i32
  }
  func.func @transform_5(%arg0: i32) -> (i32, i32) {
    %c0_i32 = arith.constant 0 : i32
    %c0_i32_0 = arith.constant 0 : i32
    %c0_i32_1 = arith.constant 0 : i32
    return %c0_i32, %c0_i32_0 : i32, i32
  }
  func.func @transform_6(%arg0: i32) -> (i32, i32) {
    %c0_i32 = arith.constant 0 : i32
    %c0_i32_0 = arith.constant 0 : i32
    %c0_i32_1 = arith.constant 0 : i32
    return %c0_i32, %c0_i32_0 : i32, i32
  }
  func.func @transform_7(%arg0: i32) -> (i32, i32) {
    %c0_i32 = arith.constant 0 : i32
    %c0_i32_0 = arith.constant 0 : i32
    %c0_i32_1 = arith.constant 0 : i32
    return %c0_i32, %c0_i32_0 : i32, i32
  }
  func.func @transform_8(%arg0: i32) -> (i32, i32) {
    %c0_i32 = arith.constant 0 : i32
    %c0_i32_0 = arith.constant 0 : i32
    %c0_i32_1 = arith.constant 0 : i32
    return %c0_i32, %c0_i32_0 : i32, i32
  }
  func.func @transform_9(%arg0: i32) -> (i32, i32) {
    %c0_i32 = arith.constant 0 : i32
    %c0_i32_0 = arith.constant 0 : i32
    %c0_i32_1 = arith.constant 0 : i32
    return %c0_i32, %c0_i32_0 : i32, i32
  }
  func.func @transform_10(%arg0: i32) -> (i32, i32) {
    %c0_i32 = arith.constant 0 : i32
    %c0_i32_0 = arith.constant 0 : i32
    %c0_i32_1 = arith.constant 0 : i32
    return %c0_i32, %c0_i32_0 : i32, i32
  }
  func.func @transform_11(%arg0: i32) -> (i32, i32) {
    %c0_i32 = arith.constant 0 : i32
    %c0_i32_0 = arith.constant 0 : i32
    %c0_i32_1 = arith.constant 0 : i32
    return %c0_i32, %c0_i32_0 : i32, i32
  }
  func.func @transform_12(%arg0: i32) -> (i32, i32) {
    %c0_i32 = arith.constant 0 : i32
    %c0_i32_0 = arith.constant 0 : i32
    %c0_i32_1 = arith.constant 0 : i32
    return %c0_i32, %c0_i32_0 : i32, i32
  }
  func.func @transform_13(%arg0: i32) -> (i32, i32) {
    %c0_i32 = arith.constant 0 : i32
    %c0_i32_0 = arith.constant 0 : i32
    return %arg0, %c0_i32 : i32, i32
  }
}

</mosaic_0001>

<bundles_post_ra>
// kernel: ws_al_mlpnet_forward.1
= control target key start
LH: loop header
LB: loop body
LE: loop exit
PB: predicated region body
PF: predicated region fallthrough
CT: control target
= control target key end

     0   :  { %s1090_s24 = smov 60   ;;  %vm227_vm0 = vcmask 1041408   ;;  %vm60_vm1 = vcmask 490496   ;;  %vm223_vm2 = vcmask 556032   ;;  %vm404_vm3 = vcmask 1043456   ;;  %s1091_s23 = smov 10   ;;  %s1485_s0 = inlined_call_operand.vmem [shape: f32[8,392], index: 0, kind: input, shape index: {}]   ;;  %s1486_s1 = inlined_call_operand.vmem [shape: bf16[196,200], index: 1, kind: input, shape index: {}]   ;;  %s1487_s3 = inlined_call_operand.vmem [shape: bf16[200,84], index: 3, kind: input, shape index: {}]   ;;  %s1488_s4 = inlined_call_operand.vmem [shape: f32[1,84], index: 4, kind: input, shape index: {}]   ;;  %s1489_s9 = inlined_call_operand.vmem [shape: bf16[200,84], index: 9, kind: input, shape index: {}]   ;;  %s1490_s2 = inlined_call_operand.vmem [shape: f32[1,200], index: 2, kind: input, shape index: {}]   ;;  %s1491_s6 = inlined_call_operand.vmem [shape: f32[1,10], index: 6, kind: input, shape index: {}]   ;;  %s1492_s5 = inlined_call_operand.vmem [shape: bf16[84,10], index: 5, kind: input, shape index: {}]   ;;  %s1493_s7 = inlined_call_operand.vmem [shape: bf16[20,200], index: 7, kind: input, shape index: {}]   ;;  %s1494_s10 = inlined_call_operand.vmem [shape: f32[1,84], index: 10, kind: input, shape index: {}]   ;;  %s1495_s8 = inlined_call_operand.vmem [shape: f32[1,200], index: 8, kind: input, shape index: {}]   ;;  %s1496_s11 = inlined_call_operand.vmem [shape: f32[1,84], index: 11, kind: input, shape index: {}]   ;;  %s1497_s12 = inlined_call_operand.<no memory space> [shape: f32[1,1], index: 12, kind: input, shape index: {}]   ;;  %s1498_s13 = inlined_call_operand.vmem [shape: f32[8,128], index: 13, kind: output, shape index: {}]  }
   0x1   :  { %v1166_v0 = vld [vmem:[%s1485_s0 + $0x8] sm:$0xff]  ;;  %v49_v1 = vld [vmem:[%s1485_s0 + $0x10] sm:$0xff]  ;;  %v1025_v4 = vld [vmem:[%s1486_s1 + $0x74] sm:$0xf0]  ;;  %vm400_vm4 = vcmask 588800   ;;  %vm487_vm5 = vcmask 687104  }
   0x2   :  { %v1068_v2 = vpack.i.bf16 %v49_v1, %v1166_v0  ;;  %v840_v3 = vld [vmem:[%s1486_s1 + $0x70] sm:$0xf]  ;;  %v1024_v5 = vld [vmem:[%s1486_s1 + $0x74] sm:$0xf]  ;;  %v842_v7 = vld [vmem:[%s1486_s1 + $0x78] sm:$0xf0] }
   0x3   :  { %v841_v6 = vor.u32 %v1025_v4, %v840_v3  ;;  %v832_v8 = vld [vmem:[%s1486_s1 + $0x60] sm:$0xf]  ;;  %v1023_v9 = vld [vmem:[%s1486_s1 + $0x64] sm:$0xf0]  ;;  %v845_v10 = vor.u32 %v1024_v5, %v842_v7  ;;  %v1022_v11 = vld [vmem:[%s1486_s1 + $0x64] sm:$0xf] }
   0x4   :  { %1069 = vrot.lane.b32.xlu0 %v1068_v2, %s1090_s24  ;;  %v834_v12 = vld [vmem:[%s1486_s1 + $0x68] sm:$0xf0]  ;;  %v833_v13 = vor.u32 %v1023_v9, %v832_v8  ;;  %v824_v15 = vld [vmem:[%s1486_s1 + $0x50] sm:$0xf]  ;;  %v1021_v16 = vld [vmem:[%s1486_s1 + $0x54] sm:$0xf0] }
   0x5   :  { %234 = vmatpush.bf16.msra.mxu0 %v841_v6  ;;  %262 = vmatpush.bf16.msra.mxu2 %v845_v10  ;;  %v837_v14 = vor.u32 %v1022_v11, %v834_v12  ;;  %v1020_v17 = vld [vmem:[%s1486_s1 + $0x54] sm:$0xf]  ;;  %v826_v18 = vld [vmem:[%s1486_s1 + $0x58] sm:$0xf0]  ;;  %v91_v19 = vld [vmem:[%s1486_s1 + $0xc0] sm:$0x33]  ;;  %v825_v21 = vor.u32 %v1021_v16, %v824_v15 }
   0x6   :  { %v50_v20 = vld [vmem:[%s1485_s0 + $0x18] sm:$0xff]  ;;  %v171_v22 = vunpack.c.l.b16 %v91_v19  ;;  %v172_v23 = vunpack.c.h.b16 %v91_v19  ;;  %v829_v24 = vor.u32 %v1020_v17, %v826_v18  ;;  %v816_v25 = vld [vmem:[%s1486_s1 + $0x40] sm:$0xf]  ;;  %v1019_v26 = vld [vmem:[%s1486_s1 + $0x44] sm:$0xf0]  ;;  %vm508_vm6 = vcmask 80896  }
   0x7   :  { %v1018_v27 = vld [vmem:[%s1486_s1 + $0x44] sm:$0xf]  ;;  %v818_v28 = vld [vmem:[%s1486_s1 + $0x48] sm:$0xf0]  ;;  %v872_v31 = vld [vmem:[%s1486_s1 + $0xb0] sm:$0xf]  ;;  %v817_v35 = vor.u32 %v1019_v26, %v816_v25 }
   0x8   :  { %v197_v29 = vpack.c.b16 %v171_v22, %v171_v22  ;;  %v198_v30 = vpack.c.b16 %v172_v23, %v172_v23  ;;  %v1033_v32 = vld [vmem:[%s1486_s1 + $0xb4] sm:$0xf0]  ;;  %v1032_v33 = vld [vmem:[%s1486_s1 + $0xb4] sm:$0xf]  ;;  %v874_v34 = vld [vmem:[%s1486_s1 + $0xb8] sm:$0xf0]  ;;  %v821_v38 = vor.u32 %v1018_v27, %v818_v28 }
   0x9   :  { %235 = vmatpush.bf16.msra.mxu0 %v833_v13  ;;  %263 = vmatpush.bf16.msra.mxu2 %v837_v14  ;;  %v808_v39 = vld [vmem:[%s1486_s1 + $0x30] sm:$0xf]  ;;  %v1017_v40 = vld [vmem:[%s1486_s1 + $0x34] sm:$0xf0]  ;;  %v873_v41 = vor.u32 %v1033_v32, %v872_v31  ;;  %v1016_v42 = vld [vmem:[%s1486_s1 + $0x34] sm:$0xf]  ;;  %v877_v44 = vor.u32 %v1032_v33, %v874_v34 }
   0xa   :  { %v229_v36 = vsel %vm227_vm0, %v197_v29, 0  ;;  %v232_v37 = vsel %vm227_vm0, %v198_v30, 0  ;;  %v810_v43 = vld [vmem:[%s1486_s1 + $0x38] sm:$0xf0]  ;;  %v809_v45 = vor.u32 %v1017_v40, %v808_v39  ;;  %v800_v47 = vld [vmem:[%s1486_s1 + $0x20] sm:$0xf] }
   0xb   :  { %251 = vmatpush.bf16.msra.mxu1 %v229_v36  ;;  %279 = vmatpush.bf16.msra.mxu3 %v232_v37  ;;  %v813_v46 = vor.u32 %v1016_v42, %v810_v43  ;;  %v1015_v48 = vld [vmem:[%s1486_s1 + $0x24] sm:$0xf0]  ;;  %v1014_v49 = vld [vmem:[%s1486_s1 + $0x24] sm:$0xf]  ;;  %v802_v50 = vld [vmem:[%s1486_s1 + $0x28] sm:$0xf0] }
   0xc   :  { %58 = vrot.lane.b32.xlu0 %v50_v20, %s1090_s24  ;;  %v801_v51 = vor.u32 %v1015_v48, %v800_v47  ;;  %v805_v52 = vor.u32 %v1014_v49, %v802_v50  ;;  %v792_v53 = vld [vmem:[%s1486_s1 + $0x10] sm:$0xf]  ;;  %v1013_v54 = vld [vmem:[%s1486_s1 + $0x14] sm:$0xf0]  ;;  %v1012_v55 = vld [vmem:[%s1486_s1 + $0x14] sm:$0xf] }
   0xd   :  { %236 = vmatpush.bf16.msra.mxu0 %v825_v21  ;;  %264 = vmatpush.bf16.msra.mxu2 %v829_v24  ;;  %v794_v56 = vld [vmem:[%s1486_s1 + $0x18] sm:$0xf0]  ;;  %v793_v57 = vor.u32 %v1013_v54, %v792_v53  ;;  %v864_v59 = vld [vmem:[%s1486_s1 + $0xa0] sm:$0xf]  ;;  %v1031_v60 = vld [vmem:[%s1486_s1 + $0xa4] sm:$0xf0] }
   0xe   :  { %v797_v58 = vor.u32 %v1012_v55, %v794_v56  ;;  %v1030_v61 = vld [vmem:[%s1486_s1 + $0xa4] sm:$0xf]  ;;  %v865_v62 = vor.u32 %v1031_v60, %v864_v59  ;;  %v866_v63 = vld [vmem:[%s1486_s1 + $0xa8] sm:$0xf0]  ;;  %v784_v2 = vld [vmem:[%s1486_s1] sm:$0xf] }
   0xf   :  { %252 = vmatpush.bf16.msra.mxu1 %v873_v41  ;;  %280 = vmatpush.bf16.msra.mxu3 %v877_v44  ;;  %v869_v1 = vor.u32 %v1030_v61, %v866_v63  ;;  %v1011_v3 = vld [vmem:[%s1486_s1 + $0x4] sm:$0xf0]  ;;  %v1010_v4 = vld [vmem:[%s1486_s1 + $0x4] sm:$0xf]  ;;  %v786_v6 = vld [vmem:[%s1486_s1 + $0x8] sm:$0xf0] }
  0x10   :  { %v785_v5 = vor.u32 %v1011_v3, %v784_v2  ;;  %v856_v7 = vld [vmem:[%s1486_s1 + $0x90] sm:$0xf]  ;;  %v1029_v8 = vld [vmem:[%s1486_s1 + $0x94] sm:$0xf0]  ;;  %v789_v9 = vor.u32 %v1010_v4, %v786_v6  ;;  %v1028_v11 = vld [vmem:[%s1486_s1 + $0x94] sm:$0xf] }
  0x11   :  { %237 = vmatpush.bf16.msra.mxu0 %v817_v35  ;;  %265 = vmatpush.bf16.msra.mxu2 %v821_v38  ;;  %v857_v10 = vor.u32 %v1029_v8, %v856_v7  ;;  %v858_v12 = vld [vmem:[%s1486_s1 + $0x98] sm:$0xf0]  ;;  %v848_v14 = vld [vmem:[%s1486_s1 + $0x80] sm:$0xf]  ;;  %v1027_v15 = vld [vmem:[%s1486_s1 + $0x84] sm:$0xf0] }
  0x12   :  { %v861_v13 = vor.u32 %v1028_v11, %v858_v12  ;;  %v1026_v16 = vld [vmem:[%s1486_s1 + $0x84] sm:$0xf]  ;;  %v849_v17 = vor.u32 %v1027_v15, %v848_v14  ;;  %v850_v18 = vld [vmem:[%s1486_s1 + $0x88] sm:$0xf0]  ;;  %v1041_v20 = vld [vmem:[%s1487_s3 + $0x38] sm:$0xff]  ;;  %vm561_vm7 = vcmask 162816  }
  0x13   :  { %253 = vmatpush.bf16.msra.mxu1 %v865_v62  ;;  %281 = vmatpush.bf16.msra.mxu3 %v869_v1  ;;  %v853_v19 = vor.u32 %v1026_v16, %v850_v18  ;;  %v1040_v21 = vld [vmem:[%s1487_s3 + $0x30] sm:$0xff]  ;;  %v1039_v22 = vld [vmem:[%s1487_s3 + $0x28] sm:$0xff]  ;;  %v47_v26 = vld [vmem:[%s1485_s0] sm:$0xff]  ;;  %vm775_vm12 = vcmask 171008  }
  0x14   :  { %v1038_v32 = vld [vmem:[%s1487_s3 + $0x20] sm:$0xff]  ;;  %v1037_v35 = vld [vmem:[%s1487_s3 + $0x18] sm:$0xff]  ;;  %v1036_v37 = vld [vmem:[%s1487_s3 + $0x10] sm:$0xff] }
  0x15   :  { %238 = vmatpush.bf16.msra.mxu0 %v809_v45  ;;  %266 = vmatpush.bf16.msra.mxu2 %v813_v46  ;;  %v320_v33 = vld [vmem:[%s1487_s3 + $0x60] sm:$0xf]  ;;  %v1045_v40 = vld [vmem:[%s1487_s3 + $0x58] sm:$0xff]  ;;  %v1035_v42 = vld [vmem:[%s1487_s3 + $0x8] sm:$0xff] }
  0x16   :  { %v374_v34 = vunpack.c.l.b16 %v320_v33  ;;  %v625_v38 = vld [vmem:[%s1489_s9 + $0x60] sm:$0xf]  ;;  %v1044_v43 = vld [vmem:[%s1487_s3 + $0x50] sm:$0xff]  ;;  %v1043_v46 = vld [vmem:[%s1487_s3 + $0x48] sm:$0xff] }
  0x17   :  { %254 = vmatpush.bf16.msra.mxu1 %v857_v10  ;;  %282 = vmatpush.bf16.msra.mxu3 %v861_v13  ;;  %v679_v39 = vunpack.c.l.b16 %v625_v38  ;;  %v1034_v45 = vld [vmem:[%s1487_s3] sm:$0xff]  ;;  %v449_v10 = vld [vmem:[%s1492_s5 + $0x28] sm:$0x3]  ;;  %v1049_v15 = vld [vmem:[%s1492_s5 + $0x18] sm:$0xff] }
  0x18   :  { %v387_v36 = vpack.c.b16 %v374_v34, %v374_v34  ;;  %v1042_v47 = vld [vmem:[%s1487_s3 + $0x40] sm:$0xff]  ;;  %v475_v11 = vunpack.c.l.b16 %v449_v10  ;;  %v1048_v16 = vld [vmem:[%s1492_s5 + $0x10] sm:$0xff] }
  0x19   :  { %239 = vmatpush.bf16.msra.mxu0 %v801_v51  ;;  %267 = vmatpush.bf16.msra.mxu2 %v805_v52  ;;  %v692_v41 = vpack.c.b16 %v679_v39, %v679_v39  ;;  %v92_v49 = vld [vmem:[%s1490_s2] sm:$0x3] }
  0x1a   :  { %v94_v52 = vperm.slane %v92_v49, 0  ;;  %v481_v12 = vpack.c.b16 %v475_v11, %v475_v11  ;;  %v1050_v14 = vld [vmem:[%s1492_s5 + $0x20] sm:$0xff] }
  0x1b   :  { %255 = vmatpush.bf16.msra.mxu1 %v849_v17  ;;  %283 = vmatpush.bf16.msra.mxu3 %v853_v19  ;;  %v709_v44 = vsel %vm404_vm3, %v692_v41, 0  ;;  %v1047_v17 = vld [vmem:[%s1492_s5 + $0x8] sm:$0xff]  ;;  %v1046_v18 = vld [vmem:[%s1492_s5] sm:$0xff] }
  0x1c   :  { %v492_v13 = vsel %vm227_vm0, %v481_v12, 0 }
  0x1d   :  { %240 = vmatpush.bf16.msra.mxu0 %v793_v57  ;;  %268 = vmatpush.bf16.msra.mxu2 %v797_v58  ;;  %v95_v57 = vperm.slane %v92_v49, 1 }
  0x1f   :  { %408 = vmatpush.bf16.msrb.mxu1 %v1041_v20 }
  0x21   :  { %241 = vmatpush.bf16.msra.mxu0 %v785_v5  ;;  %269 = vmatpush.bf16.msra.mxu2 %v789_v9 }
  0x23   :  { %409 = vmatpush.bf16.msrb.mxu1 %v1040_v21  ;;  %v1073_v21 = vld [vmem:[%s1488_s4] ss:$0 sm:$0xff] }
  0x25   :  { %496 = vmatpush.bf16.msrb.mxu0 %v492_v13  ;;  %v1054_v13 = vld [vmem:[%s1489_s9 + $0x8] sm:$0xff] }
  0x27   :  { %410 = vmatpush.bf16.msrb.mxu1 %v1039_v22 }
  0x29   :  { %497 = vmatpush.bf16.msrb.mxu0 %v1050_v14  ;;  %v1063_v14 = vld [vmem:[%s1489_s9 + $0x50] sm:$0xff] }
  0x2b   :  { %411 = vmatpush.bf16.msrb.mxu1 %v1038_v32  ;;  %v1074_v32 = vld [vmem:[%s1491_s6] ss:$0 sm:$0xff] }
  0x2d   :  { %498 = vmatpush.bf16.msrb.mxu0 %v1049_v15  ;;  %v1053_v15 = vld [vmem:[%s1489_s9] sm:$0xff] }
  0x2f   :  { %412 = vmatpush.bf16.msrb.mxu1 %v1037_v35 }
  0x31   :  { %499 = vmatpush.bf16.msrb.mxu0 %v1048_v16  ;;  %v1062_v16 = vld [vmem:[%s1489_s9 + $0x48] sm:$0xff] }
  0x33   :  { %413 = vmatpush.bf16.msrb.mxu1 %v1036_v37 }
  0x35   :  { %500 = vmatpush.bf16.msrb.mxu0 %v1047_v17  ;;  %v1061_v17 = vld [vmem:[%s1489_s9 + $0x40] sm:$0xff] }
  0x37   :  { %414 = vmatpush.bf16.msrb.mxu1 %v1035_v42 }
  0x39   :  { %501 = vmatpush.bf16.msrb.mxu0 %v1046_v18  ;;  %v540_v18 = vld [vmem:[%s1495_s8] sm:$0x3] }
  0x3b   :  { %415 = vmatpush.bf16.msrb.mxu1 %v1034_v45 }
  0x76   :  { %v1070_v23 = vpop.permute.xlu0 %1069 }
  0x77   :  { %v1072_v24 = vunpack.i.h.bf16 %v1070_v23  ;;  %v1071_v25 = vunpack.i.l.bf16 %v1070_v23 }
  0x79   :  { %v61_v27 = vsel %vm60_vm1, %v1071_v25, %v1072_v24 }
  0x7a   :  { %v65_v28 = vpack.c.bf16 %v61_v27, %v47_v26 }
  0x7c   :  { %242 = vmatmul.bf16.vlgmr.msra.gmra.mxu0 %v65_v28  ;;  %270 = vmatmul.bf16.vlgmr.msra.gmra.mxu2 %v65_v28 }
  0x7e   :  { %v59_v29 = vpop.permute.xlu0 %58 }
  0x7f   :  { %v62_v30 = vsel %vm60_vm1, %v1072_v24, %v59_v29 }
  0x80   :  { %v66_v31 = vpack.c.bf16 %v62_v30, %v1166_v0  ;;  %v406_v0 = vsel %vm404_vm3, %v387_v36, 0 }
  0x81   :  { %425 = vmatpush.bf16.msrb.mxu3 %v406_v0 }
  0x82   :  { %878 = vmatmul.msk.bf16.vlgmr.msra.gmra.mxu1 %vm223_vm2, %v66_v31  ;;  %879 = vmatmul.msk.bf16.vlgmr.msra.gmra.mxu3 %vm223_vm2, %v66_v31 }
  0x83   :  { %727 = vmatpush.bf16.msra.mxu1 %v709_v44 }
  0x85   :  { %426 = vmatpush.bf16.msrb.mxu3 %v1045_v40 }
  0x89   :  { %427 = vmatpush.bf16.msrb.mxu3 %v1044_v43 }
  0x8d   :  { %428 = vmatpush.bf16.msrb.mxu3 %v1043_v46 }
  0x91   :  { %429 = vmatpush.bf16.msrb.mxu3 %v1042_v47  ;;  %v539_v47 = vld [vmem:[%s1493_s7 + $0x10] sm:$0x33] }
  0x92   :  { %v554_v49 = vunpack.c.h.b16 %v539_v47 }
  0xf9   :  { %v243_v48 = vpop.f32.mrf.mxu0 }
  0xfa   :  { %v244_v54 = vadd.f32 %v243_v48, %v94_v52  ;;  %v553_v48 = vunpack.c.l.b16 %v539_v47 }
  0xff   :  { %v257_v50 = vpop.f32.mrf.mxu1  ;;  %v271_v51 = vpop.f32.mrf.mxu2 }
 0x100   :  { %v258_v56 = vadd.f32 %v257_v50, %v244_v54  ;;  %v272_v63 = vadd.f32 %v271_v51, %v95_v57  ;;  %v952_v50 = vld [vmem:[%s1493_s7] sm:$0xf]  ;;  %v557_v51 = vpack.c.b16 %v553_v48, %v553_v48  ;;  %v1051_v54 = vld [vmem:[%s1493_s7 + $0x4] sm:$0xf] }
 0x101   :  { %v245_v53 = vpop.f32.mrf.mxu0 }
 0x102   :  { %v246_v58 = vadd.f32 %v245_v53, %v94_v52  ;;  %v290_v62 = vmax.f32 %v258_v56, 0.0  ;;  %v558_v52 = vpack.c.b16 %v554_v49, %v554_v49  ;;  %v1052_v53 = vld [vmem:[%s1493_s7 + $0x4] sm:$0xf0]  ;;  %v566_v56 = vsel %vm227_vm0, %v557_v51, 0 }
 0x103   :  { %577 = vmatpush.bf16.msra.mxu0 %v566_v56 }
 0x105   :  { %v285_v55 = vpop.f32.mrf.mxu3 }
 0x106   :  { %v286_v2 = vadd.f32 %v285_v55, %v272_v63  ;;  %v954_v55 = vld [vmem:[%s1493_s7 + $0x8] sm:$0xf0]  ;;  %v1060_v63 = vld [vmem:[%s1489_s9 + $0x38] sm:$0xff] }
 0x107   :  { %v259_v59 = vpop.f32.mrf.mxu1  ;;  %v273_v61 = vpop.f32.mrf.mxu2  ;;  %711 = vmatpush.bf16.msrb.mxu2 %v1060_v63 }
 0x108   :  { %v260_v60 = vadd.f32 %v259_v59, %v246_v58  ;;  %v274_v4 = vadd.f32 %v273_v61, %v95_v57  ;;  %v291_v7 = vmax.f32 %v286_v2, 0.0  ;;  %v569_v57 = vsel %vm227_vm0, %v558_v52, 0  ;;  %v1064_v2 = vld [vmem:[%s1489_s9 + $0x58] sm:$0xff] }
 0x109   :  { %590 = vmatpush.bf16.msra.mxu3 %v569_v57  ;;  %v953_v58 = vor.u32 %v1052_v53, %v952_v50  ;;  %v957_v59 = vor.u32 %v1051_v54, %v954_v55  ;;  %728 = vmatpush.bf16.msra.mxu1 %v1064_v2 }
 0x10a   :  { %v292_v1 = vmax.f32 %v260_v60, 0.0 }
 0x10b   :  { %578 = vmatpush.bf16.msra.mxu0 %v953_v58 }
 0x10c   :  { %v294_v3 = vpack.c.bf16 %v292_v1, %v290_v62  ;;  %v1059_v1 = vld [vmem:[%s1489_s9 + $0x30] sm:$0xff] }
 0x10d   :  { %v287_v5 = vpop.f32.mrf.mxu3  ;;  %591 = vmatpush.bf16.msra.mxu3 %v957_v59  ;;  %712 = vmatpush.bf16.msrb.mxu2 %v1059_v1 }
 0x10e   :  { %v288_v6 = vadd.f32 %v287_v5, %v274_v4  ;;  %416 = vmatmul.bf16.vlgmr.msrb.gmra.mxu1 %v294_v3  ;;  %v1058_v3 = vld [vmem:[%s1489_s9 + $0x28] sm:$0xff]  ;;  %v1057_v4 = vld [vmem:[%s1489_s9 + $0x20] sm:$0xff]  ;;  %v1056_v5 = vld [vmem:[%s1489_s9 + $0x18] sm:$0xff] }
 0x10f   :  { %729 = vmatpush.bf16.msra.mxu1 %v1063_v14 }
 0x110   :  { %v293_v8 = vmax.f32 %v288_v6, 0.0 }
 0x111   :  { %713 = vmatpush.bf16.msrb.mxu2 %v1058_v3 }
 0x112   :  { %v295_v9 = vpack.c.bf16 %v293_v8, %v291_v7  ;;  %v1055_v7 = vld [vmem:[%s1489_s9 + $0x10] sm:$0xff] }
 0x113   :  { %730 = vmatpush.bf16.msra.mxu1 %v1062_v16 }
 0x114   :  { %928 = vmatmul.msk.bf16.vlgmr.msrb.gmra.mxu3 %vm400_vm4, %v295_v9 }
 0x115   :  { %714 = vmatpush.bf16.msrb.mxu2 %v1057_v4 }
 0x117   :  { %731 = vmatpush.bf16.msra.mxu1 %v1061_v17 }
 0x119   :  { %715 = vmatpush.bf16.msrb.mxu2 %v1056_v5 }
 0x11d   :  { %716 = vmatpush.bf16.msrb.mxu2 %v1055_v7 }
 0x121   :  { %717 = vmatpush.bf16.msrb.mxu2 %v1054_v13 }
 0x125   :  { %718 = vmatpush.bf16.msrb.mxu2 %v1053_v15 }
 0x18b   :  { %v417_v19 = vpop.f32.mrf.mxu1 }
 0x18c   :  { %v418_v23 = vadd.f32 %v1073_v21, %v417_v19  ;;  %v542_v19 = vperm.slane %v540_v18, 0 }
 0x193   :  { %v419_v22 = vpop.f32.mrf.mxu1 }
 0x194   :  { %v420_v24 = vadd.f32 %v1073_v21, %v419_v22 }
 0x197   :  { %v431_v20 = vpop.f32.mrf.mxu3 }
 0x198   :  { %v432_v25 = vadd.f32 %v431_v20, %v418_v23  ;;  %v543_v23 = vperm.slane %v540_v18, 1 }
 0x19a   :  { %v436_v28 = vmax.f32 %v432_v25, 0.0 }
 0x19f   :  { %v433_v26 = vpop.f32.mrf.mxu3 }
 0x1a0   :  { %v434_v27 = vadd.f32 %v433_v26, %v420_v24 }
 0x1a2   :  { %v437_v29 = vmax.f32 %v434_v27, 0.0 }
 0x1a4   :  { %v438_v30 = vpack.c.bf16 %v437_v29, %v436_v28 }
 0x1a6   :  { %949 = vmatmul.msk.bf16.vlgmr.msrb.gmra.mxu0 %vm487_vm5, %v438_v30 }
 0x223   :  { %v503_v31 = vpop.f32.mrf.mxu0 }
 0x224   :  { %v504_v36 = vadd.f32 %v1074_v32, %v503_v31  ;;  %v18_v31 = vstv %s1497_s12 }
 0x225   :  { %19 = vst [vmem:[#allocation2] sm:$0x1] %v18_v31 }
 0x226   :  { %v509_v0 = vsel %vm508_vm6, %v504_v36, -inf }
 0x22b   :  { %v505_v33 = vpop.f32.mrf.mxu0 }
 0x22c   :  { %v506_v34 = vadd.f32 %v1074_v32, %v505_v33  ;;  %v1075_v32 = vld [vmem:[%s1494_s10] ss:$0 sm:$0xff]  ;;  %s1092_s10 = smov 20  }
 0x22e   :  { %v512_v35 = vsel %vm508_vm6, %v506_v34, -inf }
 0x22f   :  { %513 = vmax.xlane.f32.xlu1 %v512_v35 }
 0x237   :  { %510 = vmax.xlane.f32.xlu1 %v509_v0  ;;  %v1076_v0 = vld [vmem:[%s1496_s11] ss:$0 sm:$0xff] }
 0x2a2   :  { %v514_v37 = vpop.xlane.xlu1 %513 }
 0x2a3   :  { %v516_v38 = vsub.f32 %v506_v34, %v514_v37 }
 0x2a5   :  { %v519_v39 = vmul.f32 1.442695, %v516_v38 }
 0x2a7   :  { %1078 = vpow2.f32 %v519_v39 }
 0x2aa   :  { %v511_v40 = vpop.xlane.xlu1 %510 }
 0x2ab   :  { %v515_v41 = vsub.f32 %v504_v36, %v511_v40 }
 0x2ad   :  { %v1079_v42 = vpop.eup %1078  ;;  %v517_v43 = vmul.f32 1.442695, %v515_v41 }
 0x2ae   :  { %v524_v44 = vsel %vm508_vm6, %v1079_v42, 0.0 }
 0x2af   :  { %1080 = vpow2.f32 %v517_v43  ;;  %525 = vadd.xlane.f32.xlu2 %v524_v44 }
 0x2b5   :  { %v1081_v45 = vpop.eup %1080 }
 0x2b6   :  { %v521_v46 = vsel %vm508_vm6, %v1081_v45, 0.0 }
 0x2b7   :  { %522 = vadd.xlane.f32.xlu2 %v521_v46 }
 0x322   :  { %v526_v60 = vpop.xlane.xlu2 %525 }
 0x323   :  { %1082 = vrcp.f32 %v526_v60 }
 0x329   :  { %v1083_v61 = vpop.eup %1082 }
 0x32a   :  { %v530_v62 = vmul.f32 %v1083_v61, %v1079_v42  ;;  %v523_v6 = vpop.xlane.xlu2 %522  ;;  %v1077_v42 = vld [vmem:[#allocation2] ss:$0 sm:$0xff] }
 0x32b   :  { %1084 = vrcp.f32 %v523_v6 }
 0x32c   :  { %532 = vrot.lane.b32.xlu0 %v530_v62, %s1091_s23 }
 0x331   :  { %v1085_v8 = vpop.eup %1084 }
 0x332   :  { %v529_v9 = vmul.f32 %v1085_v8, %v1081_v45 }
 0x39e   :  { %v533_v10 = vpop.permute.xlu0 %532 }
 0x39f   :  { %v1445_v11 = vsel %vm508_vm6, %v529_v9, %v533_v10 }
 0x3a0   :  { %v536_v12 = vpack.c.bf16 %v1445_v11, %v1445_v11 }
 0x3a2   :  { %958 = vmatmul.msk.bf16.vlgmr.msra.gmra.mxu0 %vm561_vm7, %v536_v12  ;;  %959 = vmatmul.msk.bf16.vlgmr.msra.gmra.mxu3 %vm561_vm7, %v536_v12 }
 0x41f   :  { %v580_v20 = vpop.f32.mrf.mxu0 }
 0x420   :  { %v581_v21 = vadd.f32 %v580_v20, %v542_v19 }
 0x422   :  { %v597_v22 = vmax.f32 %v581_v21, 0.0 }
 0x424   :  { %v599_v24 = vpack.c.bf16 %v597_v22, %v597_v22 }
 0x425   :  { %v593_v25 = vpop.f32.mrf.mxu3 }
 0x426   :  { %v594_v26 = vadd.f32 %v593_v25, %v543_v23  ;;  %719 = vmatmul.bf16.vlgmr.msrb.gmra.mxu2 %v599_v24 }
 0x427   :  { %v582_v27 = vpop.f32.mrf.mxu0 }
 0x428   :  { %v598_v28 = vmax.f32 %v594_v26, 0.0 }
 0x42a   :  { %v600_v29 = vpack.c.bf16 %v598_v28, %v598_v28 }
 0x42c   :  { %1008 = vmatmul.msk.bf16.vlgmr.msra.gmra.mxu1 %vm400_vm4, %v600_v29 }
 0x42d   :  { %v595_v30 = vpop.f32.mrf.mxu3 }
 0x4a9   :  { %v720_v33 = vpop.f32.mrf.mxu2  ;;  %v733_v34 = vpop.f32.mrf.mxu1 }
 0x4aa   :  { %v721_v35 = vadd.f32 %v1075_v32, %v720_v33 }
 0x4ac   :  { %v734_v36 = vadd.f32 %v733_v34, %v721_v35 }
 0x4ae   :  { %v737_v37 = vmax.f32 %v734_v36, 0.0 }
 0x4b0   :  { %v742_v38 = vmul.f32 %v1076_v0, %v737_v37 }
 0x4b1   :  { %v722_v39 = vpop.f32.mrf.mxu2  ;;  %v735_v40 = vpop.f32.mrf.mxu1 }
 0x4b2   :  { %v743_v41 = vsel %vm487_vm5, %v742_v38, 0.0 }
 0x4b3   :  { %744 = vadd.xlane.f32.xlu1 %v743_v41 }
 0x526   :  { %v745_v43 = vpop.xlane.xlu1 %744 }
 0x527   :  { %v750_v44 = vadd.f32 %v1077_v42, %v745_v43 }
 0x529   :  { %v1009_v45 = vmul.f32 -1.442695, %v750_v44 }
 0x52b   :  { %1086 = vpow2.f32 %v1009_v45 }
 0x531   :  { %v1087_v46 = vpop.eup %1086 }
 0x532   :  { %v754_v47 = vadd.f32 1.0, %v1087_v46 }
 0x534   :  { %1088 = vrcp.f32 %v754_v47  ;;  %v766_v51 = vand.u32 2147483648, %v754_v47  ;;  %v764_v53 = vand.u32 2147483647, %v754_v47  ;;  %vm760_vm9 = vweird.f32 %v754_v47 }
 0x536   :  { %v767_v55 = vor.u32 1.1754944e-38, %v766_v51  ;;  %vm765_vm11 = vcmp.eq.f32.partialorder %v764_v53, 8.507059e+37 }
 0x53a   :  { %v1089_v48 = vpop.eup %1088 }
 0x53b   :  { %v756_v49 = vmul.f32 %v1089_v48, %v754_v47  ;;  %vm761_vm8 = vweird.f32 %v1089_v48 }
 0x53c   :  { %vm762_vm10 = vmor %vm760_vm9, %vm761_vm8 }
 0x53d   :  { %v757_v50 = vsub.f32 1.0, %v756_v49 }
 0x53f   :  { %v758_v52 = vmul.f32 %v1089_v48, %v757_v50 }
 0x541   :  { %v759_v54 = vadd.f32 %v1089_v48, %v758_v52 }
 0x543   :  { %v763_v56 = vsel %vm762_vm10, %v1089_v48, %v759_v54 }
 0x544   :  { %v768_v57 = vsel %vm765_vm11, %v767_v55, %v763_v56 }
 0x545   :  { %771 = vrot.lane.b32.xlu2 %v768_v57, %s1092_s10 }
 0x59f   :  { %v772_v58 = vpop.permute.xlu2 %771 }
 0x5a0   :  { %v774_v59 = vsel %vm561_vm7, %v1445_v11, %v772_v58 }
 0x5a1   :  { %v776_v60 = vsel %vm775_vm12, %v774_v59, 0.0 }
 0x5a2   :  { %777 = vst [vmem:[%s1498_s13] sm:$0xff] %v776_v60 }

</bundles_post_ra>
